<compile_context>
chip_gen: v5e
topology: v5e:2x2
jax: 0.10.0
libtpu: 0.0.40
codegen_flags: <defaults>
</compile_context>

<pallas_src>
import functools
import math

import jax
import jax.numpy as jnp
from jax.experimental import pallas as pl
from jax.experimental.pallas import tpu as pltpu


def _round_up(a: int, b: int) -> int:
    return (a + b - 1) // b * b


def _cdiv(a: int, b: int) -> int:
    return (a + b - 1) // b


def _pe_kernel(inv_freq_ref, sin_f_ref, cos_f_ref, o_ref, *, positions_per_tile: int):
    # inv_freq_ref: (1, Wd)   per-column frequency  w[c] = exp((2i)*(-ln 1e4 / d_model))
    # sin_f_ref / cos_f_ref: (tr, Wd)  sin / cos of the tile-local angle
    #   F[r, c] = local_pos(r, c) * w[c] + phase[c]   (tile-invariant, VMEM resident)
    # o_ref: (tr, Wd) output tile (lane-dense wide layout).
    base_pos = (pl.program_id(0) * positions_per_tile).astype(jnp.float32)
    b = base_pos * inv_freq_ref[...]                       # (1, Wd)
    sin_b = jnp.sin(b)                                     # only 2*Wd transcendentals
    cos_b = jnp.cos(b)                                     # per grid step
    # sin(base_angle + F) = sin(B)cos(F) + cos(B)sin(F): 2 mul + 1 add per element.
    o_ref[...] = (sin_b * cos_f_ref[...] + cos_b * sin_f_ref[...]).astype(o_ref.dtype)


def _build_pe_table(
    seq_len: int,
    d_model: int,
    *,
    dtype=jnp.float32,
    vmem_tile_bytes: int = 2 * 1024 * 1024,
) -> jax.Array:
    """Builds the (seq_len, d_model) sinusoidal table with a Pallas kernel."""
    assert d_model % 2 == 0, "d_model must be even (same as the PyTorch module)"

    itemsize = jnp.dtype(dtype).itemsize
    sublane = max(8, 32 // itemsize)                 # 8 for f32, 16 for bf16, 32 for 8-bit

    # Wide lane-dense layout: each stored row packs k consecutive positions so that the
    # stored row width Wd = k * d_model is a multiple of 128 (unmasked vector stores).
    if d_model % 128 == 0:
        k = 1
    else:
        k = 128 // math.gcd(d_model, 128)
    wd = k * d_model

    rows_needed = _cdiv(seq_len, k)                  # wide rows covering seq_len positions

    # Tile rows: byte budget (keeps DMA near the HBM roofline plateau), sublane multiple,
    # and at least 2 grid steps when there is enough work (v7x megacore sharding).
    rows_by_vmem = max(sublane, (vmem_tile_bytes // (wd * itemsize)) // sublane * sublane)
    rows_half = max(sublane, _round_up(_cdiv(rows_needed, 2), sublane))
    tile_rows = min(rows_by_vmem, rows_half, _round_up(rows_needed, sublane))

    num_tiles = _cdiv(rows_needed, tile_rows)
    rows_total = num_tiles * tile_rows               # padded so blocks divide evenly

    # --- tile-invariant sub-tables (computed once, VMEM-resident via constant index_map)
    cols = jnp.arange(wd, dtype=jnp.int32)
    feat = cols % d_model
    inv_freq = jnp.exp(((feat // 2) * 2).astype(jnp.float32) * (-math.log(10000.0) / d_model))
    phase = (feat % 2).astype(jnp.float32) * (0.5 * math.pi)      # cos(x) = sin(x + pi/2)
    local_pos = (
        jnp.arange(tile_rows, dtype=jnp.int32)[:, None] * k + (cols // d_model)[None, :]
    ).astype(jnp.float32)                                          # (tile_rows, wd)
    f_angle = local_pos * inv_freq[None, :] + phase[None, :]
    sin_f = jnp.sin(f_angle)
    cos_f = jnp.cos(f_angle)
    inv_freq_row = inv_freq[None, :]                               # (1, wd)

    out_wide = pl.pallas_call(
        functools.partial(_pe_kernel, positions_per_tile=tile_rows * k),
        out_shape=jax.ShapeDtypeStruct((rows_total, wd), dtype),
        grid=(num_tiles,),
        in_specs=[
            pl.BlockSpec((1, wd), lambda i: (0, 0)),           # inv_freq (resident)
            pl.BlockSpec((tile_rows, wd), lambda i: (0, 0)),   # sin(F)   (resident)
            pl.BlockSpec((tile_rows, wd), lambda i: (0, 0)),   # cos(F)   (resident)
        ],
        out_specs=pl.BlockSpec((tile_rows, wd), lambda i: (i, 0)),
        compiler_params=pltpu.CompilerParams(
            dimension_semantics=("parallel",),
        ),
    )(inv_freq_row, sin_f, cos_f)

    # Undo the wide packing; padded tail positions are sliced off.
    return out_wide.reshape(rows_total * k, d_model)[:seq_len]


def positional_encoding(x: jax.Array, d_model: int, max_len: int = 5000, *, dtype=jnp.float32):
    """Equivalent of PositionalEncoding(d_model, max_len).forward(x) -> (1, S, d_model)."""
    _, seq_len, _ = x.shape
    assert seq_len <= max_len, "sequence length exceeds max_len"
    pe = _build_pe_table(seq_len, d_model, dtype=dtype)
    return pe[None, :, :]


def _reference_pe(seq_len: int, d_model: int) -> jnp.ndarray:
    pos = jnp.arange(seq_len, dtype=jnp.float32)[:, None]
    div = jnp.exp(jnp.arange(0, d_model, 2, dtype=jnp.float32) * (-math.log(10000.0) / d_model))
    pe = jnp.zeros((seq_len, d_model), dtype=jnp.float32)
    pe = pe.at[:, 0::2].set(jnp.sin(pos * div))
    pe = pe.at[:, 1::2].set(jnp.cos(pos * div))
    return pe[None, :, :]


if __name__ == "__main__":
    key = jax.random.PRNGKey(0)

    # Small shape consistent with the module: batch=2, seq=8, d_model=32.
    B, S, D = 2, 8, 32
    x = jax.random.normal(key, (B, S, D), dtype=jnp.float32)
    out = jax.block_until_ready(positional_encoding(x, d_model=D, max_len=5000))
    ref = _reference_pe(S, D)
    assert out.shape == (1, S, D), out.shape
    assert jnp.allclose(out, ref, atol=1e-4, rtol=1e-5), "mismatch vs reference (S=8)"

    # Exercise the multi-tile path (>= 2 grid steps) and the wide re-layout.
    S2 = 48
    x2 = jax.random.normal(key, (B, S2, D), dtype=jnp.float32)
    out2 = jax.block_until_ready(positional_encoding(x2, d_model=D, max_len=5000))
    ref2 = _reference_pe(S2, D)
    assert out2.shape == (1, S2, D), out2.shape
    assert jnp.allclose(out2, ref2, atol=1e-4, rtol=1e-5), "mismatch vs reference (S=48)"

    print("KERNEL_OK")
</pallas_src>

<mosaic_0001>
module attributes {stable_mosaic.version = 11 : i64} {
  func.func @_pe_kernel(%arg0: i32, %arg1: memref<1x128xf32, #tpu.memory_space<vmem>>, %arg2: memref<8x128xf32, #tpu.memory_space<vmem>>, %arg3: memref<8x128xf32, #tpu.memory_space<vmem>>, %arg4: memref<8x128xf32, #tpu.memory_space<vmem>>) attributes {dimension_semantics = [#tpu.dimension_semantics<parallel>], iteration_bounds = array<i64: 1>, scalar_prefetch = 0 : i64, scratch_operands = 0 : i64, tpu.core_type = #tpu.core_type<tc>, window_params = [{pipeline_mode = #tpu.pipeline_mode<synchronous>, transform_indices = @transform_0, window_bounds = array<i64: 1, 128>}, {pipeline_mode = #tpu.pipeline_mode<synchronous>, transform_indices = @transform_1, window_bounds = array<i64: 8, 128>}, {pipeline_mode = #tpu.pipeline_mode<synchronous>, transform_indices = @transform_2, window_bounds = array<i64: 8, 128>}, {transform_indices = @transform_3, window_bounds = array<i64: 8, 128>}]} {
    %c32_i32 = arith.constant 32 : i32
    %0 = arith.muli %arg0, %c32_i32 : i32
    %1 = arith.sitofp %0 : i32 to f32
    %c0 = arith.constant 0 : index
    %c0_0 = arith.constant 0 : index
    %2 = vector.load %arg1[%c0, %c0_0] : memref<1x128xf32, #tpu.memory_space<vmem>>, vector<1x128xf32>
    %3 = vector.broadcast %1 : f32 to vector<1x128xf32>
    %4 = arith.mulf %3, %2 : vector<1x128xf32>
    %5 = math.sin %4 : vector<1x128xf32>
    %6 = math.cos %4 : vector<1x128xf32>
    %c0_1 = arith.constant 0 : index
    %c0_2 = arith.constant 0 : index
    %7 = vector.load %arg3[%c0_1, %c0_2] : memref<8x128xf32, #tpu.memory_space<vmem>>, vector<8x128xf32>
    %8 = vector.broadcast %5 : vector<1x128xf32> to vector<8x128xf32>
    %9 = arith.mulf %8, %7 : vector<8x128xf32>
    %c0_3 = arith.constant 0 : index
    %c0_4 = arith.constant 0 : index
    %10 = vector.load %arg2[%c0_3, %c0_4] : memref<8x128xf32, #tpu.memory_space<vmem>>, vector<8x128xf32>
    %11 = vector.broadcast %6 : vector<1x128xf32> to vector<8x128xf32>
    %12 = arith.mulf %11, %10 : vector<8x128xf32>
    %13 = arith.addf %9, %12 : vector<8x128xf32>
    %c0_5 = arith.constant 0 : index
    %c0_6 = arith.constant 0 : index
    %14 = vector.load %arg4[%c0_5, %c0_6] : memref<8x128xf32, #tpu.memory_space<vmem>>, vector<8x128xf32>
    tpu.vector_store %arg4[%c0_5, %c0_6], %13 {strides = array<i32>} : memref<8x128xf32, #tpu.memory_space<vmem>>, vector<8x128xf32>,
    return
  }
  func.func @transform_0(%arg0: i32) -> (i32, i32) {
    %c0_i32 = arith.constant 0 : i32
    %c0_i32_0 = arith.constant 0 : i32
    %c0_i32_1 = arith.constant 0 : i32
    return %c0_i32, %c0_i32_0 : i32, i32
  }
  func.func @transform_1(%arg0: i32) -> (i32, i32) {
    %c0_i32 = arith.constant 0 : i32
    %c0_i32_0 = arith.constant 0 : i32
    %c0_i32_1 = arith.constant 0 : i32
    return %c0_i32, %c0_i32_0 : i32, i32
  }
  func.func @transform_2(%arg0: i32) -> (i32, i32) {
    %c0_i32 = arith.constant 0 : i32
    %c0_i32_0 = arith.constant 0 : i32
    %c0_i32_1 = arith.constant 0 : i32
    return %c0_i32, %c0_i32_0 : i32, i32
  }
  func.func @transform_3(%arg0: i32) -> (i32, i32) {
    %c0_i32 = arith.constant 0 : i32
    %c0_i32_0 = arith.constant 0 : i32
    return %arg0, %c0_i32 : i32, i32
  }
}

</mosaic_0001>

<bundles_post_ra>
// kernel: tpu_custom_call.1
= control target key start
LH: loop header
LB: loop body
LE: loop exit
PB: predicated region body
PF: predicated region fallthrough
CT: control target
= control target key end

     0   :  { %8 = vsyncpa [#allocation3], 0  ;;  %s608_s0 = inlined_call_operand.hbm [shape: f32[1,128], index: 0, kind: input, shape index: {}]   ;;  %s609_s1 = inlined_call_operand.hbm [shape: f32[8,128], index: 1, kind: input, shape index: {}]   ;;  %s610_s2 = inlined_call_operand.hbm [shape: f32[8,128], index: 2, kind: input, shape index: {}]   ;;  %s611_s3 = inlined_call_operand.hbm [shape: f32[8,128], index: 3, kind: output, shape index: {}]  }
   0x1   :  { %9 = vsyncpa [#allocation6], 0  ;;  %s27_s14 = sshll.u32 %s609_s1, 4  ;;  %s28_s14 = int_to_ptr.hbm [resolvable:$true] %s27_s14 }
   0x2   :  { %10 = vsyncpa [#allocation4], 0  ;;  %s519_s15 = smov [#allocation5]   ;;  %s16_s19 = sshll.u32 %s608_s0, 4  ;;  %s17_s19 = int_to_ptr.hbm [resolvable:$true] %s16_s19 }
   0x3   :  { %s29_s16 = sshll.u32 %s519_s15, 4  ;;  %s520_s20 = smov [#allocation2]   ;;  %s30_s16 = int_to_ptr.vmem [resolvable:$true] %s29_s16 }
   0x4   :  { %32 = dma.hbm_to_vmem [thread:$0]  %s28_s14, 128, %s30_s16, [#allocation6]  }
   0x5   :  { %s18_s21 = sshll.u32 %s520_s20, 4  ;;  %s38_s24 = sshll.u32 %s610_s2, 4  ;;  %s19_s21 = int_to_ptr.vmem [resolvable:$true] %s18_s21  ;;  %s39_s24 = int_to_ptr.hbm [resolvable:$true] %s38_s24 }
   0x6   :  { %21 = dma.hbm_to_vmem [thread:$0]  %s17_s19, 16, %s19_s21, [#allocation3]  }
   0x7   :  { %s521_s1 = smov [#allocation7]  }
   0x8   :  { %s40_s25 = sshll.u32 %s521_s1, 4  ;;  %s41_s25 = int_to_ptr.vmem [resolvable:$true] %s40_s25 }
   0x9   :  { %43 = dma.hbm_to_vmem [thread:$0]  %s39_s24, 128, %s41_s25, [#allocation6]  }
   0xa   :  { %513 = dma.done.wait [#allocation3], 16  }
   0xb   :  { %514 = vsyncadd [#allocation3], 4294967280 }
   0xc   :  { %515 = dma.done.wait [#allocation6], 256  }
   0xd   :  { %516 = vsyncadd [#allocation6], 4294967040  ;;  %v58_v0 = vld [vmem:[#allocation2] sm:$0x1]  ;;  %v522_v13 = vmov 683565275  }
   0xe   :  { %v559_v1 = vmul.f32 0.0, %v58_v0  ;;  %v523_v15 = vmov 2475754826   ;;  %v524_v17 = vmov 2131351028   ;;  %s529_s0 = smov [#allocation8]  }
   0xf   :  { %v525_v19 = vmov 2102212464   ;;  %v526_v21 = vmov 920167782   ;;  %v527_v27 = vmov 1326507024  }
  0x10   :  { %v64_v2 = vand.u32 2139095040, %v559_v1  ;;  %v61_v4 = vand.u32 2147483647, %v559_v1  ;;  %vm63_vm12 = vcmp.lt.s32.totalorder %v559_v1, 0  ;;  %s387_s2 = sshll.u32 %s529_s0, 4  ;;  %s389_s28 = sshll.u32 %s611_s3, 4  ;;  %s388_s2 = int_to_ptr.vmem [resolvable:$true] %s387_s2  ;;  %s390_s28 = int_to_ptr.hbm [resolvable:$true] %s389_s28 }
  0x12   :  { %v65_v3 = vshrl.u32 %v64_v2, 23  ;;  %v68_v7 = vand.u32 8388607, %v61_v4  ;;  %v528_v2 = vmov 0   ;;  %vm62_vm13 = vcmp.le.f32.partialorder %v61_v4, 0.7853982 }
  0x14   :  { %v400_v5 = vadd.s32 4294967169, %v65_v3  ;;  %v69_v10 = vor.u32 8388608, %v68_v7 }
  0x16   :  { %v71_v6 = vadd.s32 1, %v400_v5  ;;  %v568_v29 = vshll.u32 %v69_v10, 8 }
  0x18   :  { %vm72_vm0 = vcmp.gt.s32.totalorder %v71_v6, 0  ;;  %v110_v41 = vand.u32 65535, %v568_v29  ;;  %v111_v42 = vshrl.u32 %v568_v29, 16 }
  0x19   :  { %v73_v8 = vsel %vm72_vm0, %v71_v6, 0 }
  0x1a   :  { %v75_v9 = vand.u32 31, %v73_v8  ;;  %v565_v11 = vshrl.u32 %v73_v8, 5 }
  0x1c   :  { %v76_v12 = vsub.s32 32, %v75_v9  ;;  %v78_v14 = vshll.u32 %v522_v13, %v75_v9  ;;  %v81_v16 = vshll.u32 %v523_v15, %v75_v9  ;;  %v84_v18 = vshll.u32 %v524_v17, %v75_v9 }
  0x1d   :  { %v87_v20 = vshll.u32 %v525_v19, %v75_v9  ;;  %v90_v22 = vshll.u32 %v526_v21, %v75_v9  ;;  %vm93_vm1 = vcmp.lt.s32.totalorder %v565_v11, 1  ;;  %vm96_vm2 = vcmp.lt.s32.totalorder %v565_v11, 4 }
  0x1e   :  { %v79_v23 = vshrl.u32 %v523_v15, %v76_v12  ;;  %v82_v24 = vshrl.u32 %v524_v17, %v76_v12  ;;  %v85_v25 = vshrl.u32 %v525_v19, %v76_v12  ;;  %v88_v26 = vshrl.u32 %v526_v21, %v76_v12 }
  0x1f   :  { %v91_v28 = vshrl.u32 %v527_v27, %v76_v12  ;;  %vm95_vm3 = vcmp.lt.s32.totalorder %v565_v11, 3  ;;  %vm94_vm4 = vcmp.lt.s32.totalorder %v565_v11, 2  ;;  %v77_v49 = vshrl.u32 %v522_v13, %v76_v12 }
  0x20   :  { %v80_v30 = vor.u32 %v79_v23, %v78_v14  ;;  %v83_v31 = vor.u32 %v82_v24, %v81_v16  ;;  %v86_v32 = vor.u32 %v85_v25, %v84_v18  ;;  %v89_v33 = vor.u32 %v88_v26, %v87_v20 }
  0x21   :  { %v92_v34 = vor.u32 %v91_v28, %v90_v22 }
  0x22   :  { %v101_v35 = vsel %vm93_vm1, %v80_v30, %v83_v31  ;;  %v105_v36 = vsel %vm93_vm1, %v83_v31, %v86_v32  ;;  %v102_v37 = vsel %vm96_vm2, %v89_v33, 920167782  ;;  %v97_v62 = vsel %vm93_vm1, %v77_v49, %v80_v30 }
  0x23   :  { %v106_v38 = vsel %vm96_vm2, %v92_v34, 1326507024  ;;  %v103_v39 = vsel %vm95_vm3, %v86_v32, %v102_v37  ;;  %v98_v0 = vsel %vm96_vm2, %v86_v32, 2102212464 }
  0x24   :  { %v107_v40 = vsel %vm95_vm3, %v89_v33, %v106_v38  ;;  %v104_v43 = vsel %vm94_vm4, %v101_v35, %v103_v39  ;;  %v99_v13 = vsel %vm95_vm3, %v83_v31, %v98_v0 }
  0x25   :  { %v108_v44 = vsel %vm94_vm4, %v105_v36, %v107_v40  ;;  %v134_v47 = vand.u32 65535, %v104_v43  ;;  %v135_v48 = vshrl.u32 %v104_v43, 16  ;;  %v100_v21 = vsel %vm94_vm4, %v97_v62, %v99_v13 }
  0x26   :  { %v112_v45 = vand.u32 65535, %v108_v44  ;;  %v113_v46 = vshrl.u32 %v108_v44, 16  ;;  %v154_v25 = vmul.u32 %v568_v29, %v100_v21  ;;  %vm204_vm4 = vweird.f32 %v559_v1  ;;  %v375_v21 = vld [vmem:[#allocation5] sm:$0xff] }
  0x27   :  { %v136_v53 = vmul.u32 %v134_v47, %v110_v41  ;;  %v137_v54 = vmul.u32 %v135_v48, %v110_v41  ;;  %v138_v55 = vmul.u32 %v134_v47, %v111_v42  ;;  %v139_v59 = vmul.u32 %v135_v48, %v111_v42 }
  0x28   :  { %v114_v50 = vmul.u32 %v112_v45, %v110_v41  ;;  %v115_v51 = vmul.u32 %v113_v46, %v110_v41  ;;  %v116_v52 = vmul.u32 %v112_v45, %v111_v42  ;;  %v117_v56 = vmul.u32 %v113_v46, %v111_v42 }
  0x29   :  { %v140_v60 = vshll.u32 %v137_v54, 16  ;;  %v142_v61 = vshll.u32 %v138_v55, 16  ;;  %v141_v10 = vshrl.u32 %v137_v54, 16  ;;  %v143_v17 = vshrl.u32 %v138_v55, 16 }
  0x2a   :  { %v118_v57 = vshll.u32 %v115_v51, 16  ;;  %v120_v58 = vshll.u32 %v116_v52, 16  ;;  %v119_v6 = vshrl.u32 %v115_v51, 16  ;;  %v121_v14 = vshrl.u32 %v116_v52, 16 }
  0x2b   :  { %vm144_vm6 = vc.u32 %v136_v53, %v140_v60  ;;  %v146_v5 = vadd.s32 %v140_v60, %v136_v53 }
  0x2c   :  { %vm122_vm5 = vc.u32 %v114_v50, %v118_v57  ;;  %v124_v63 = vadd.s32 %v118_v57, %v114_v50  ;;  %v145_v8 = vsel %vm144_vm6, 1, %v528_v2 }
  0x2d   :  { %v123_v3 = vsel %vm122_vm5, 1, %v528_v2  ;;  %v147_v12 = vadd.s32 %v145_v8, %v139_v59  ;;  %vm148_vm8 = vc.u32 %v146_v5, %v142_v61  ;;  %v150_v20 = vadd.s32 %v146_v5, %v142_v61 }
  0x2e   :  { %v125_v7 = vadd.s32 %v123_v3, %v117_v56  ;;  %vm126_vm7 = vc.u32 %v124_v63, %v120_v58  ;;  %v149_v16 = vsel %vm148_vm8, 1, %v528_v2 }
  0x2f   :  { %v127_v9 = vsel %vm126_vm7, 1, %v528_v2  ;;  %v151_v18 = vadd.s32 %v149_v16, %v147_v12 }
  0x30   :  { %v129_v15 = vadd.s32 %v127_v9, %v125_v7 }
  0x31   :  { %v152_v22 = vadd.s32 %v151_v18, %v141_v10 }
  0x32   :  { %v130_v19 = vadd.s32 %v129_v15, %v119_v6 }
  0x33   :  { %v153_v24 = vadd.s32 %v152_v22, %v143_v17 }
  0x34   :  { %v131_v23 = vadd.s32 %v130_v19, %v121_v14 }
  0x35   :  { %v157_v26 = vadd.s32 1, %v153_v24 }
  0x36   :  { %vm156_vm9 = vc.u32 %v131_v23, %v150_v20  ;;  %v155_v11 = vadd.s32 %v150_v20, %v131_v23  ;;  %v370_v20 = vld [vmem:[#allocation7] sm:$0xff] }
  0x37   :  { %v158_v27 = vsel %vm156_vm9, %v157_v26, %v153_v24 }
  0x38   :  { %v159_v28 = vadd.s32 %v158_v27, %v154_v25 }
  0x3a   :  { %v160_v30 = vadd.s32 536870912, %v159_v28 }
  0x3c   :  { %v161_v31 = vshrl.u32 %v160_v30, 30 }
  0x3e   :  { %v162_v32 = vshll.u32 %v161_v31, 30  ;;  %v185_v49 = vsub.s32 4, %v161_v31 }
  0x40   :  { %v163_v33 = vsub.s32 %v159_v28, %v162_v32  ;;  %v186_v52 = vsel %vm63_vm12, %v185_v49, %v161_v31 }
  0x41   :  { %v188_v55 = vsel %vm62_vm13, 0, %v186_v52 }
  0x42   :  { %vm164_vm10 = vcmp.lt.s32.totalorder %v163_v33, 0  ;;  %v165_v34 = vsub.s32 0, %v163_v33  ;;  %v205_v60 = vadd.s32 3, %v188_v55  ;;  %v360_v3 = vand.u32 3, %v188_v55 }
  0x44   :  { %v166_v35 = vsel %vm164_vm10, %v165_v34, %v163_v33  ;;  %v206_v2 = vand.u32 3, %v205_v60  ;;  %vm365_vm15 = vcmp.eq.s32.totalorder %v360_v3, 2  ;;  %vm362_vm2 = vcmp.eq.s32.totalorder %v360_v3, 0 }
  0x45   :  { %v167_v36 = vclz %v166_v35  ;;  %vm361_vm3 = vcmp.lt.s32.totalorder %v360_v3, 2 }
  0x46   :  { %vm211_vm14 = vcmp.eq.s32.totalorder %v206_v2, 2  ;;  %vm207_vm0 = vcmp.lt.s32.totalorder %v206_v2, 2  ;;  %vm208_vm1 = vcmp.eq.s32.totalorder %v206_v2, 0 }
  0x47   :  { %v401_v37 = vadd.s32 4294967294, %v167_v36 }
  0x49   :  { %vm402_vm11 = vcmp.lt.s32.totalorder %v401_v37, 0 }
  0x4a   :  { %v170_v38 = vsel %vm402_vm11, 0, %v401_v37 }
  0x4b   :  { %v171_v39 = vsub.s32 32, %v170_v38  ;;  %v172_v40 = vshll.u32 %v163_v33, %v170_v38  ;;  %v175_v41 = vsub.s32 4294967266, %v170_v38 }
  0x4d   :  { %v173_v29 = vshrl.u32 %v155_v11, %v171_v39  ;;  %v176_v42 = vadd.s32 127, %v175_v41 }
  0x4f   :  { %v174_v43 = vor.u32 %v173_v29, %v172_v40  ;;  %v177_v44 = vshll.u32 %v176_v42, 23 }
  0x51   :  { %v178_v45 = vor.u32 4788187, %v177_v44  ;;  %v181_v46 = vcvt.s32.f32 %v174_v43 }
  0x53   :  { %v179_v47 = vand.u32 2147483647, %v178_v45 }
  0x55   :  { %v182_v48 = vmul.f32 %v181_v46, %v179_v47 }
  0x57   :  { %v183_v50 = vxor.u32 2147483648, %v182_v48 }
  0x59   :  { %v184_v51 = vsel %vm63_vm12, %v183_v50, %v182_v48 }
  0x5a   :  { %v187_v53 = vsel %vm62_vm13, %v559_v1, %v184_v51 }
  0x5b   :  { %v189_v54 = vmul.f32 %v187_v53, %v187_v53 }
  0x5d   :  { %v190_v56 = vmul.f32 -0.001358992, %v189_v54  ;;  %v197_v57 = vmul.f32 -0.00019511016, %v189_v54 }
  0x5f   :  { %v191_v58 = vadd.f32 0.041655596, %v190_v56  ;;  %v198_v59 = vadd.f32 0.008332121, %v197_v57 }
  0x61   :  { %v192_v61 = vmul.f32 %v191_v58, %v189_v54  ;;  %v199_v62 = vmul.f32 %v198_v59, %v189_v54 }
  0x63   :  { %v193_v63 = vadd.f32 -0.4999988, %v192_v61  ;;  %v200_v0 = vadd.f32 -0.16666654, %v199_v62 }
  0x65   :  { %v194_v5 = vmul.f32 %v193_v63, %v189_v54  ;;  %v201_v4 = vmul.f32 %v200_v0, %v189_v54 }
  0x67   :  { %v195_v6 = vadd.f32 1.0, %v194_v5  ;;  %v202_v7 = vadd.f32 1.0, %v201_v4 }
  0x69   :  { %v203_v8 = vmul.f32 %v202_v7, %v187_v53  ;;  %v212_v9 = vxor.u32 2147483648, %v195_v6 }
  0x6b   :  { %v209_v10 = vxor.u32 2147483648, %v203_v8  ;;  %v213_v12 = vsel %vm211_vm14, %v212_v9, %v203_v8  ;;  %v367_v13 = vsel %vm365_vm15, %v212_v9, %v203_v8 }
  0x6d   :  { %v210_v14 = vsel %vm208_vm1, %v195_v6, %v209_v10  ;;  %v364_v15 = vsel %vm362_vm2, %v195_v6, %v209_v10 }
  0x6e   :  { %v214_v16 = vsel %vm207_vm0, %v210_v14, %v213_v12  ;;  %v368_v17 = vsel %vm361_vm3, %v364_v15, %v367_v13 }
  0x6f   :  { %v215_v18 = vsel %vm204_vm4, nan, %v214_v16  ;;  %v369_v19 = vsel %vm204_vm4, nan, %v368_v17 }
  0x70   :  { %v372_v22 = vperm.slane %v215_v18, 0  ;;  %v377_v23 = vperm.slane %v369_v19, 0 }
  0x72   :  { %v374_v24 = vmul.f32 %v372_v22, %v370_v20  ;;  %v379_v25 = vmul.f32 %v377_v23, %v375_v21 }
  0x74   :  { %v380_v26 = vadd.f32 %v379_v25, %v374_v24 }
  0x76   :  { %381 = vst [vmem:[#allocation8] sm:$0xff] %v380_v26 }
  0x77   :  { %392 = dma.vmem_to_hbm [thread:$0]  %s388_s2, 128, %s390_s28, [#allocation4]  }
  0x78   :  { %517 = dma.done.wait [#allocation4], 128  }
  0x79   :  { %518 = vsyncadd [#allocation4], 4294967168 }
  0x7a   :  { %397 = vsyncpa [#allocation3], 1 }
  0x7b   :  { %398 = vsyncpa [#allocation6], 1 }
  0x7c   :  { %399 = vsyncpa [#allocation4], 1 }

</bundles_post_ra>
